<compile_context>
chip_gen: v7x
topology: tpu7x:2x2x1
jax: 0.10.0
libtpu: 0.0.40
codegen_flags: <defaults>
</compile_context>

<pallas_src>
import functools

import jax
import jax.numpy as jnp
from jax import lax
from jax.experimental import pallas as pl
from jax.experimental.pallas import tpu as pltpu


def _round_up(x, m):
    return (x + m - 1) // m * m


def _road_embedding_kernel(idx_ref, w_ref, b_ref, out_ref, *, n_cols):
    """One grid step over a batch tile.

    idx_ref: (TB, n_cols) int32 — global row indices into the stacked fused
             weight (5 embedding columns, each pre-offset into its disjoint
             vocab segment).
    w_ref:   (K, Hp) compute dtype — stacked fused tables (Linear folded in),
             K % 128 == 0, grid-invariant.
    b_ref:   (1, Hp) f32 — Linear bias (zero-padded to Hp lanes), grid-invariant.
    out_ref: (TB, Hp) — lane-dense output tile.
    """
    idx = idx_ref[...]                                   # (TB, n_cols)
    w = w_ref[...]                                       # (K, Hp)
    tb = idx.shape[0]
    k = w.shape[0]

    # Combined one-hot as a boolean OR of per-column indicator masks (each
    # column selects a disjoint vocab segment), then a single cast to the MXU
    # operand dtype. Keeps the build in mask vregs -> minimal VALU passes.
    iota = lax.broadcasted_iota(jnp.int32, (tb, k), 1)
    mask = iota == idx[:, 0:1]
    for c in range(1, n_cols):
        mask = mask | (iota == idx[:, c:c + 1])
    onehot = mask.astype(w.dtype)

    # Single K-aligned MXU matmul with f32 accumulation; bias added in f32.
    acc = jnp.dot(onehot, w, preferred_element_type=jnp.float32)
    out_ref[...] = (acc + b_ref[...]).astype(out_ref.dtype)


def prepare_road_embedding(params, *, compute_dtype=jnp.bfloat16, mxu_multiple=128):
    """Fold the Linear into the 5 embedding tables and stack/pad them.

    Call ONCE per parameter set (jit / cache the result); this is plain XLA
    work that would otherwise dominate small-batch forward calls.
    """
    tables = [params["lanes"], params["maxspeed"], params["length"],
              params["lon"], params["lat"]]
    w = params["w"]                      # (5*E, H)  == torch Linear weight.T
    b = params["b"]                      # (1, H)
    E = tables[0].shape[1]
    H = w.shape[1]
    vocabs = [int(t.shape[0]) for t in tables]
    v_total = sum(vocabs)

    # NOTE: for v_total >> 5*E (very large vocabularies) the fused contraction
    # dim K ~ v_total inflates MXU FLOPs / weight VMEM vs. gather-then-(5E x H)
    # matmul; revisit the fold (two-stage kernel or K-tiled grid axis) there.
    fused = jnp.concatenate(
        [tables[t] @ w[t * E:(t + 1) * E, :] for t in range(5)], axis=0)  # (V_total, H)

    K = _round_up(v_total, mxu_multiple)
    Hp = _round_up(H, mxu_multiple)       # lane-dense output width
    stacked = jnp.zeros((K, Hp), jnp.float32)
    stacked = stacked.at[:v_total, :H].set(fused)
    stacked = stacked.astype(compute_dtype)

    bias = jnp.zeros((1, Hp), jnp.float32).at[:, :H].set(b)

    offs, acc = [], 0
    for v in vocabs:
        offs.append(acc)
        acc += v
    offsets = jnp.asarray(offs, jnp.int32)                                 # (5,)

    return {"stacked": stacked, "bias": bias, "offsets": offsets,
            "H": H, "v_total": v_total}


def road_embedding_apply(batch_seq_cat, prepared, *, tb=None, out_dtype=jnp.float32):
    """batch_seq_cat: (B, >=6) int. Returns (B, hid_dim) in out_dtype."""
    stacked = prepared["stacked"]
    bias = prepared["bias"]
    offsets = prepared["offsets"]
    H = prepared["H"]
    K, Hp = stacked.shape

    B = batch_seq_cat.shape[0]
    gidx = batch_seq_cat[:, 1:6].astype(jnp.int32) + offsets[None, :]      # (B, 5)
    n_cols = gidx.shape[1]

    # Batch tiling: aim for grid >= 2 (v7x shards the "parallel" axis over its
    # two TensorCores) and large tiles for big B (per-grid-step pipeline
    # overhead ~0.35 us dominates the tiny per-step compute).
    if tb is None:
        tb = max(8, min(1024, _round_up((B + 1) // 2, 8)))
    tb = max(8, _round_up(tb, 8))
    b_pad = _round_up(B, tb)
    if b_pad != B:
        gidx = jnp.pad(gidx, ((0, b_pad - B), (0, 0)))

    # Explicit scoped-VMEM budget: single-buffered weight + double-buffered
    # idx/out tiles + bias + slack (kept within v7x's 64 MiB physical VMEM).
    w_bytes = K * Hp * stacked.dtype.itemsize
    io_bytes = 2 * (tb * n_cols * 4 + tb * Hp * jnp.dtype(out_dtype).itemsize)
    vmem_limit = int(min(max(w_bytes + io_bytes + (8 << 20), 32 << 20), 64 << 20))

    def _build(resident_mode):
        kw = {} if resident_mode is None else {"pipeline_mode": resident_mode}
        return pl.pallas_call(
            functools.partial(_road_embedding_kernel, n_cols=n_cols),
            out_shape=jax.ShapeDtypeStruct((b_pad, Hp), out_dtype),
            grid=(b_pad // tb,),
            in_specs=[
                pl.BlockSpec((tb, n_cols), lambda i: (i, 0)),   # idx tile, pipelined
                pl.BlockSpec((K, Hp), lambda i: (0, 0), **kw),  # weight, VMEM-resident
                pl.BlockSpec((1, Hp), lambda i: (0, 0), **kw),  # bias, VMEM-resident
            ],
            out_specs=pl.BlockSpec((tb, Hp), lambda i: (i, 0)),
            compiler_params=pltpu.CompilerParams(
                dimension_semantics=("parallel",),
                vmem_limit_bytes=vmem_limit),
        )

    try:
        # Grid-invariant inputs single-buffered -> halves weight VMEM footprint.
        out = _build(pl.Buffered(1))(gidx, stacked, bias)
    except Exception:
        # Fallback for jax versions without single-buffer pipeline_mode support.
        out = _build(None)(gidx, stacked, bias)

    if b_pad == B and Hp == H:
        return out
    return out[:B, :H]


def road_embedding(batch_seq_cat, params, *, tb=None,
                   compute_dtype=jnp.bfloat16, out_dtype=jnp.float32):
    """Convenience one-shot wrapper (re-does the fold; prefer prepare+apply)."""
    prepared = prepare_road_embedding(params, compute_dtype=compute_dtype)
    return road_embedding_apply(batch_seq_cat, prepared, tb=tb, out_dtype=out_dtype)


def init_params(key, emb_dim, hid_dim, vocab_sizes):
    """Deterministic synthetic parameters matching the module's shapes."""
    ks = jax.random.split(key, 7)
    v_lanes, v_speed, v_len, v_lon, v_lat = vocab_sizes

    def emb(k, v, pad0):
        t = jax.random.normal(k, (v, emb_dim), dtype=jnp.float32)
        if pad0:  # padding_idx=0 -> row 0 is zero (PyTorch forward semantics)
            t = t.at[0].set(0.0)
        return t

    return {
        "lanes":    emb(ks[0], v_lanes, True),
        "maxspeed": emb(ks[1], v_speed, True),
        "length":   emb(ks[2], v_len,  True),
        "lon":      emb(ks[3], v_lon,  False),
        "lat":      emb(ks[4], v_lat,  False),
        # torch Linear weight is (H, 5E); we store its transpose (5E, H)
        "w": jax.random.normal(ks[5], (emb_dim * 5, hid_dim), dtype=jnp.float32) * 0.1,
        "b": jax.random.normal(ks[6], (1, hid_dim), dtype=jnp.float32) * 0.1,
    }


def reference(batch_seq_cat, params):
    """Pure-JAX reference mirroring the PyTorch forward."""
    e1 = params["lanes"][batch_seq_cat[:, 1]]
    e2 = params["maxspeed"][batch_seq_cat[:, 2]]
    e3 = params["length"][batch_seq_cat[:, 3]]
    e4 = params["lon"][batch_seq_cat[:, 4]]
    e5 = params["lat"][batch_seq_cat[:, 5]]
    sparse = jnp.concatenate([e1, e2, e3, e4, e5], axis=1)
    return sparse @ params["w"] + params["b"]


if __name__ == "__main__":
    key = jax.random.PRNGKey(0)
    k_par, k_idx = jax.random.split(key)

    B, emb_dim, hid_dim = 24, 16, 32
    vocab_sizes = (8, 12, 16, 20, 24)  # lanes, maxspeed, length, lon, lat

    params = init_params(k_par, emb_dim, hid_dim, vocab_sizes)

    # (B, 6) categorical features; columns 1..5 are used. Include zeros to
    # exercise padding_idx behaviour on the first three tables.
    cols = []
    ks = jax.random.split(k_idx, 6)
    cols.append(jax.random.randint(ks[0], (B, 1), 0, 100))  # col 0 unused
    for i, v in enumerate(vocab_sizes):
        cols.append(jax.random.randint(ks[i + 1], (B, 1), 0, v))
    batch_seq_cat = jnp.concatenate(cols, axis=1).astype(jnp.int32)

    ref = reference(batch_seq_cat, params)

    # Default path: fold prepared once, bf16 MXU operands, f32 accumulation,
    # f32 bias add. Default tile gives grid=2 (both v7x cores busy).
    prepared = prepare_road_embedding(params)
    out = jax.block_until_ready(road_embedding_apply(batch_seq_cat, prepared))
    assert out.shape == (B, hid_dim)
    assert jnp.allclose(out, ref, atol=2e-2, rtol=2e-2), float(jnp.max(jnp.abs(out - ref)))

    # f32-operand path matches the reference tightly; small explicit tile
    # (grid=3) exercises the pipelined multi-step path.
    prepared_f32 = prepare_road_embedding(params, compute_dtype=jnp.float32)
    out_f32 = jax.block_until_ready(
        road_embedding_apply(batch_seq_cat, prepared_f32, tb=8))
    assert jnp.allclose(out_f32, ref, atol=1e-4, rtol=1e-4), float(jnp.max(jnp.abs(out_f32 - ref)))

    # Convenience one-shot wrapper also works.
    out2 = jax.block_until_ready(road_embedding(batch_seq_cat, params))
    assert jnp.allclose(out2, ref, atol=2e-2, rtol=2e-2)

    # TODO(synk): padding_idx=0 gradient masking (training-time semantics) is
    # not represented; forward-only behaviour matches PyTorch.
    print("KERNEL_OK")
</pallas_src>

<mosaic_0001>
module attributes {stable_mosaic.version = 11 : i64} {
  func.func @_road_embedding_kernel(%arg0: i32, %arg1: memref<16x5xi32, #tpu.memory_space<vmem>>, %arg2: memref<128x128xbf16, #tpu.memory_space<vmem>>, %arg3: memref<1x128xf32, #tpu.memory_space<vmem>>, %arg4: memref<16x128xf32, #tpu.memory_space<vmem>>) attributes {dimension_semantics = [#tpu.dimension_semantics<parallel>], iteration_bounds = array<i64: 2>, scalar_prefetch = 0 : i64, scratch_operands = 0 : i64, tpu.core_type = #tpu.core_type<tc>, window_params = [{transform_indices = @transform_0, window_bounds = array<i64: 16, 5>}, {pipeline_mode = #tpu.pipeline_mode<synchronous>, transform_indices = @transform_1, window_bounds = array<i64: 128, 128>}, {pipeline_mode = #tpu.pipeline_mode<synchronous>, transform_indices = @transform_2, window_bounds = array<i64: 1, 128>}, {transform_indices = @transform_3, window_bounds = array<i64: 16, 128>}]} {
    %c0 = arith.constant 0 : index
    %c0_0 = arith.constant 0 : index
    %0 = vector.load %arg1[%c0, %c0_0] : memref<16x5xi32, #tpu.memory_space<vmem>>, vector<16x5xi32>
    %c0_1 = arith.constant 0 : index
    %c0_2 = arith.constant 0 : index
    %1 = vector.load %arg2[%c0_1, %c0_2] : memref<128x128xbf16, #tpu.memory_space<vmem>>, vector<128x128xbf16>
    %2 = tpu.iota {dimensions = array<i32: 1>} : vector<16x128xi32>
    %3 = vector.extract_strided_slice %0 {offsets = [0, 0], sizes = [16, 1], strides = [1, 1]} : vector<16x5xi32> to vector<16x1xi32>
    %4 = vector.broadcast %3 : vector<16x1xi32> to vector<16x128xi32>
    %5 = arith.cmpi eq, %2, %4 : vector<16x128xi32>
    %6 = vector.extract_strided_slice %0 {offsets = [0, 1], sizes = [16, 1], strides = [1, 1]} : vector<16x5xi32> to vector<16x1xi32>
    %7 = vector.broadcast %6 : vector<16x1xi32> to vector<16x128xi32>
    %8 = arith.cmpi eq, %2, %7 : vector<16x128xi32>
    %9 = arith.ori %5, %8 : vector<16x128xi1>
    %10 = vector.extract_strided_slice %0 {offsets = [0, 2], sizes = [16, 1], strides = [1, 1]} : vector<16x5xi32> to vector<16x1xi32>
    %11 = vector.broadcast %10 : vector<16x1xi32> to vector<16x128xi32>
    %12 = arith.cmpi eq, %2, %11 : vector<16x128xi32>
    %13 = arith.ori %9, %12 : vector<16x128xi1>
    %14 = vector.extract_strided_slice %0 {offsets = [0, 3], sizes = [16, 1], strides = [1, 1]} : vector<16x5xi32> to vector<16x1xi32>
    %15 = vector.broadcast %14 : vector<16x1xi32> to vector<16x128xi32>
    %16 = arith.cmpi eq, %2, %15 : vector<16x128xi32>
    %17 = arith.ori %13, %16 : vector<16x128xi1>
    %18 = vector.extract_strided_slice %0 {offsets = [0, 4], sizes = [16, 1], strides = [1, 1]} : vector<16x5xi32> to vector<16x1xi32>
    %19 = vector.broadcast %18 : vector<16x1xi32> to vector<16x128xi32>
    %20 = arith.cmpi eq, %2, %19 : vector<16x128xi32>
    %21 = arith.ori %17, %20 : vector<16x128xi1>
    %22 = arith.extui %21 : vector<16x128xi1> to vector<16x128xi32>
    %23 = arith.sitofp %22 : vector<16x128xi32> to vector<16x128xf32>
    %24 = arith.truncf %23 : vector<16x128xf32> to vector<16x128xbf16>
    %cst = arith.constant dense<0.000000e+00> : vector<16x128xf32>
    %25 = tpu.matmul %24, %1, %cst {dimension_numbers = #tpu.dot_dimension_numbers<[1], [0], [0], [1], [0, 0, 1, 1], [], []>} : vector<16x128xbf16>, vector<128x128xbf16>, vector<16x128xf32> -> vector<16x128xf32>
    %c0_3 = arith.constant 0 : index
    %c0_4 = arith.constant 0 : index
    %26 = vector.load %arg3[%c0_3, %c0_4] : memref<1x128xf32, #tpu.memory_space<vmem>>, vector<1x128xf32>
    %27 = vector.broadcast %26 : vector<1x128xf32> to vector<16x128xf32>
    %28 = arith.addf %25, %27 : vector<16x128xf32>
    %c0_5 = arith.constant 0 : index
    %c0_6 = arith.constant 0 : index
    %29 = vector.load %arg4[%c0_5, %c0_6] : memref<16x128xf32, #tpu.memory_space<vmem>>, vector<16x128xf32>
    tpu.vector_store %arg4[%c0_5, %c0_6], %28 {strides = array<i32>} : memref<16x128xf32, #tpu.memory_space<vmem>>, vector<16x128xf32>,
    return
  }
  func.func @transform_0(%arg0: i32) -> (i32, i32) {
    %c0_i32 = arith.constant 0 : i32
    %c0_i32_0 = arith.constant 0 : i32
    return %arg0, %c0_i32 : i32, i32
  }
  func.func @transform_1(%arg0: i32) -> (i32, i32) {
    %c0_i32 = arith.constant 0 : i32
    %c0_i32_0 = arith.constant 0 : i32
    %c0_i32_1 = arith.constant 0 : i32
    return %c0_i32, %c0_i32_0 : i32, i32
  }
  func.func @transform_2(%arg0: i32) -> (i32, i32) {
    %c0_i32 = arith.constant 0 : i32
    %c0_i32_0 = arith.constant 0 : i32
    %c0_i32_1 = arith.constant 0 : i32
    return %c0_i32, %c0_i32_0 : i32, i32
  }
  func.func @transform_3(%arg0: i32) -> (i32, i32) {
    %c0_i32 = arith.constant 0 : i32
    %c0_i32_0 = arith.constant 0 : i32
    return %arg0, %c0_i32 : i32, i32
  }
}

module attributes {stable_mosaic.version = 11 : i64} {
  func.func @_road_embedding_kernel(%arg0: i32, %arg1: memref<16x5xi32, #tpu.memory_space<vmem>>, %arg2: memref<128x128xbf16, #tpu.memory_space<vmem>>, %arg3: memref<1x128xf32, #tpu.memory_space<vmem>>, %arg4: memref<16x128xf32, #tpu.memory_space<vmem>>) attributes {dimension_semantics = [#tpu.dimension_semantics<parallel>], iteration_bounds = array<i64: 2>, scalar_prefetch = 0 : i64, scratch_operands = 0 : i64, tpu.core_type = #tpu.core_type<tc>, window_params = [{transform_indices = @transform_0, window_bounds = array<i64: 16, 5>}, {pipeline_mode = #tpu.pipeline_mode<synchronous>, transform_indices = @transform_1, window_bounds = array<i64: 128, 128>}, {pipeline_mode = #tpu.pipeline_mode<synchronous>, transform_indices = @transform_2, window_bounds = array<i64: 1, 128>}, {transform_indices = @transform_3, window_bounds = array<i64: 16, 128>}]} {
    %c0 = arith.constant 0 : index
    %c0_0 = arith.constant 0 : index
    %0 = vector.load %arg1[%c0, %c0_0] : memref<16x5xi32, #tpu.memory_space<vmem>>, vector<16x5xi32>
    %c0_1 = arith.constant 0 : index
    %c0_2 = arith.constant 0 : index
    %1 = vector.load %arg2[%c0_1, %c0_2] : memref<128x128xbf16, #tpu.memory_space<vmem>>, vector<128x128xbf16>
    %2 = tpu.iota {dimensions = array<i32: 1>} : vector<16x128xi32>
    %3 = vector.extract_strided_slice %0 {offsets = [0, 0], sizes = [16, 1], strides = [1, 1]} : vector<16x5xi32> to vector<16x1xi32>
    %4 = vector.broadcast %3 : vector<16x1xi32> to vector<16x128xi32>
    %5 = arith.cmpi eq, %2, %4 : vector<16x128xi32>
    %6 = vector.extract_strided_slice %0 {offsets = [0, 1], sizes = [16, 1], strides = [1, 1]} : vector<16x5xi32> to vector<16x1xi32>
    %7 = vector.broadcast %6 : vector<16x1xi32> to vector<16x128xi32>
    %8 = arith.cmpi eq, %2, %7 : vector<16x128xi32>
    %9 = arith.ori %5, %8 : vector<16x128xi1>
    %10 = vector.extract_strided_slice %0 {offsets = [0, 2], sizes = [16, 1], strides = [1, 1]} : vector<16x5xi32> to vector<16x1xi32>
    %11 = vector.broadcast %10 : vector<16x1xi32> to vector<16x128xi32>
    %12 = arith.cmpi eq, %2, %11 : vector<16x128xi32>
    %13 = arith.ori %9, %12 : vector<16x128xi1>
    %14 = vector.extract_strided_slice %0 {offsets = [0, 3], sizes = [16, 1], strides = [1, 1]} : vector<16x5xi32> to vector<16x1xi32>
    %15 = vector.broadcast %14 : vector<16x1xi32> to vector<16x128xi32>
    %16 = arith.cmpi eq, %2, %15 : vector<16x128xi32>
    %17 = arith.ori %13, %16 : vector<16x128xi1>
    %18 = vector.extract_strided_slice %0 {offsets = [0, 4], sizes = [16, 1], strides = [1, 1]} : vector<16x5xi32> to vector<16x1xi32>
    %19 = vector.broadcast %18 : vector<16x1xi32> to vector<16x128xi32>
    %20 = arith.cmpi eq, %2, %19 : vector<16x128xi32>
    %21 = arith.ori %17, %20 : vector<16x128xi1>
    %22 = arith.extui %21 : vector<16x128xi1> to vector<16x128xi32>
    %23 = arith.sitofp %22 : vector<16x128xi32> to vector<16x128xf32>
    %24 = arith.truncf %23 : vector<16x128xf32> to vector<16x128xbf16>
    %cst = arith.constant dense<0.000000e+00> : vector<16x128xf32>
    %25 = tpu.matmul %24, %1, %cst {dimension_numbers = #tpu.dot_dimension_numbers<[1], [0], [0], [1], [0, 0, 1, 1], [], []>} : vector<16x128xbf16>, vector<128x128xbf16>, vector<16x128xf32> -> vector<16x128xf32>
    %c0_3 = arith.constant 0 : index
    %c0_4 = arith.constant 0 : index
    %26 = vector.load %arg3[%c0_3, %c0_4] : memref<1x128xf32, #tpu.memory_space<vmem>>, vector<1x128xf32>
    %27 = vector.broadcast %26 : vector<1x128xf32> to vector<16x128xf32>
    %28 = arith.addf %25, %27 : vector<16x128xf32>
    %c0_5 = arith.constant 0 : index
    %c0_6 = arith.constant 0 : index
    %29 = vector.load %arg4[%c0_5, %c0_6] : memref<16x128xf32, #tpu.memory_space<vmem>>, vector<16x128xf32>
    tpu.vector_store %arg4[%c0_5, %c0_6], %28 {strides = array<i32>} : memref<16x128xf32, #tpu.memory_space<vmem>>, vector<16x128xf32>,
    return
  }
  func.func @transform_0(%arg0: i32) -> (i32, i32) {
    %c0_i32 = arith.constant 0 : i32
    %c0_i32_0 = arith.constant 0 : i32
    return %arg0, %c0_i32 : i32, i32
  }
  func.func @transform_1(%arg0: i32) -> (i32, i32) {
    %c0_i32 = arith.constant 0 : i32
    %c0_i32_0 = arith.constant 0 : i32
    %c0_i32_1 = arith.constant 0 : i32
    return %c0_i32, %c0_i32_0 : i32, i32
  }
  func.func @transform_2(%arg0: i32) -> (i32, i32) {
    %c0_i32 = arith.constant 0 : i32
    %c0_i32_0 = arith.constant 0 : i32
    %c0_i32_1 = arith.constant 0 : i32
    return %c0_i32, %c0_i32_0 : i32, i32
  }
  func.func @transform_3(%arg0: i32) -> (i32, i32) {
    %c0_i32 = arith.constant 0 : i32
    %c0_i32_0 = arith.constant 0 : i32
    return %arg0, %c0_i32 : i32, i32
  }
}

</mosaic_0001>

<bundles_post_ra>
// kernel: tpu_custom_call.1
= control target key start
LH: loop header
LB: loop body
LE: loop exit
PB: predicated region body
PF: predicated region fallthrough
CT: control target
= control target key end

     0   :  { %8 = vsyncpa [#allocation3], 0  ;;  %s859_s0 = inlined_call_operand.vmem [shape: s32[32,5], index: 0, kind: input, shape index: {}]   ;;  %s860_s1 = inlined_call_operand.hbm [shape: bf16[128,128], index: 1, kind: input, shape index: {}]   ;;  %s861_s2 = inlined_call_operand.vmem [shape: f32[1,128], index: 2, kind: input, shape index: {}]   ;;  %s862_s3 = inlined_call_operand.hbm [shape: f32[32,128], index: 3, kind: output, shape index: {}]  }
   0x1   :  { %9 = vsyncpa [#allocation4], 0 }
   0x2   :  { %11 = vsyncpa [#allocation4 + $0x1], 0  ;;  %s708_s12 = smov 0   ;;  %s710_s13 = smov 0  }
   0x3   :  { %s712_s14 = smov 0   ;;  %s714_s15 = smov 0  }
   0x4 LB: > { %s729_s16 = sadd.s32 4294967295, %s673_s15   ;;  %s447_s17 = sadd.s32 4294967294, %s673_s15   ;;  %s673_s15 = sphi %s714_s15, %s878_s15   ;;  %s669_s14 = sphi %s712_s14, %s877_s14   ;;  %s665_s13 = sphi %s710_s13, %s876_s13   ;;  %s661_s12 = sphi %s708_s12, %s875_s12  }
   0x5   : > { %s733_s18 = sadd.s32 1, %s673_s15   ;;  %s92_s19 = sadd.s32 1, %s669_s14 }
   0x6   : > { %s89_s20 = ssub.s32 %s673_s15, %s733_s18  ;;  %p102_p0 = scmp.ne.s32.totalorder %s669_s14, %s665_s13 }
   0x7   : > { %p90_p1 = scmp.eq.s32.totalorder %s89_s20, 0  ;;  %p103_p2 = scmp.eq.s32.totalorder %s729_s16, 1 }
   0x8   : > { %p108_p3 = scmp.ne.s32.totalorder %s665_s13, %s661_s12  ;;  %p109_p4 = scmp.eq.s32.totalorder %s447_s17, 1 }
   0x9   : > { %s744_s21 = scalar_select %p90_p1, %s669_s14, %s92_s19  }
   0xa   : > { %p746_p5 = por %p103_p2, %p102_p0  ;;  %p750_p6 = por %p109_p4, %p108_p3 }
   0xb   : > { %p448_p7 = scmp.ge.s32.totalorder %s673_s15, 1  ;;  %p116_p8 = scmp.lt.s32.totalorder %s673_s15, 3 }
   0xc   : > { %s866_s22 = scalar_select %p746_p5, 1, 0 }
   0xd   : > { %s867_s23 = scalar_select %p750_p6, 1, 0 }
   0xe   : > { %p863_p9 = scmp.eq.s32.totalorder %s729_s16, 0  ;;  %p757_p10 = pnand %p448_p7, %p116_p8 }
   0xf   : > { %s675_s25 = smov [#allocation2]   ;;  %s579_s30 = scalar_lea.hbm %s860_s1, 1024 }
  0x10   : > { %s868_s24 = scalar_select %p757_p10, 1, 0 }
  0x11   : > { %s128_s26 = sshll.u32 %s675_s25, 4  ;;  %p508_p11 = pneg %p757_p10  ;;  %s129_s26 = int_to_ptr.vmem [resolvable:$true] %s128_s26 }
  0x12   : > { %p580_p13 = scmp.ne.s32.totalorder %s860_s1, %s579_s30  ;;  %p586_p3 = scmp.lt.u32.totalorder %s579_s30, %s860_s1 }
  0x13   : > { %p765_p12 = pnand %p863_p9, %p508_p11 }
  0x15   : > { %p581_p0 = pneg %p765_p12 }
  0x17   : > { %p582_p1 = pnand %p581_p0, %p580_p13 }
  0x19   : > { %p583_p2 = pneg %p582_p1 }
  0x1b   : > { %p588_p4 = pnand %p586_p3, %p583_p2 }
  0x1d   : > { %591 = shalt.err (!%p588_p4)
}
  0x1e   : > { %s592_s8 = scalar_lea.vmem %s129_s26, 1024  ;;  %p600_p9 = scmp.lt.s32.totalorder %s129_s26, %s129_s26 }
  0x1f   : > { %p593_p7 = scmp.ne.s32.totalorder %s129_s26, %s592_s8  ;;  %p601_p6 = scmp.lt.s32.totalorder %s592_s8, %s592_s8 }
  0x21   : > { %p595_p8 = pnand %p593_p7, %p581_p0  ;;  %p602_p5 = por %p601_p6, %p600_p9 }
  0x23   : > { %p596_p11 = pneg %p595_p8 }
  0x25   : > { %p603_p10 = pnand %p602_p5, %p596_p11 }
  0x27   : > { %606 = shalt.err (!%p603_p10)
}
  0x28   : > { %s676_s9 = smov 64   ;;  %s677_s10 = smov 4  }
  0x29   : > { %511 = dma.hbm_to_vmem [thread:$0]  (!%p765_p12), %s860_s1, 1024, %s129_s26, [#allocation3], %s676_s9, %s676_s9, %s677_s10  }
  0x2a   : > { %p870_p13 = scmp.ne.s32.totalorder %s868_s24, 0 }
  0x2b   : > { %p871_p1 = scmp.eq.s32.totalorder (!%p870_p13), %s729_s16, 0 }
  0x2c   : > { %156 = sbr.rel (%p870_p13) target bundleno = 446 (0x1be), region = 32 }
  0x33   : > { %652 = dma.done.wait (%p871_p1), [#allocation3], 1024   ;;  %p872_p0 = pmov %p871_p1 }
  0x34   : > { %s454_s19 = sshll.u32 %s729_s16, 1  ;;  %v678_v0 = vmov 1   ;;  %v679_v1 = vmov 0   ;;  %v680_v2 = vmov 0.0   ;;  %v571_v5 = vld [vmem:[#allocation2] sm:$0xff]   ;;  %v572_v6 = vld [vmem:[#allocation2 + $0x8] sm:$0xff]   ;;  %v206_v20 = vlaneseq }
  0x35   : > { %654 = vsyncadd (%p872_p0), [#allocation3], 4294966272  ;;  %564 = vset.pattern.permute.xlu1 %v678_v0  ;;  %563 = vset.pattern.permute.xlu0 %v679_v1  ;;  %p181_p5 = scmp.lt.s32.totalorder %s454_s19, 3  ;;  %v573_v7 = vld [vmem:[#allocation2 + $0x10] sm:$0xff]   ;;  %v681_v8 = vmov 2   ;;  %v574_v9 = vld [vmem:[#allocation2 + $0x18] sm:$0xff]  }
  0x36   : > { %482 = vmatprep.subr.bf16.mxu0 %v680_v2  ;;  %v682_v10 = vmov 3   ;;  %v575_v11 = vld [vmem:[#allocation2 + $0x20] sm:$0xff]   ;;  %v683_v12 = vmov 4   ;;  %v576_v13 = vld [vmem:[#allocation2 + $0x28] sm:$0xff]   ;;  %v577_v14 = vld [vmem:[#allocation2 + $0x30] sm:$0xff]   ;;  %vm684_vm0 = vmmov 0  }
  0x37   : > { %s880_s19 = smov (!%p181_p5, %s454_s19), 3  ;;  %483 = vmatpush3.bf16.msra.mxu0 %v571_v5  ;;  %v578_v15 = vld [vmem:[#allocation2 + $0x38] sm:$0xff]   ;;  %498 = vmatprep.mubr.msk.bf16.mxu0 %vm684_vm0, %v680_v2  ;;  %v207_v22 = vand.u32 127, %v206_v20  ;;  %s177_s27 = sand.u32 1, %s665_s13   ;;  %v458_v31 = vld [vmem:[%s861_s2] ss:$0 sm:$0xff] }
  0x38   : > { %s455_s20 = sshll.u32 %s880_s19, 3  ;;  %484 = vmatprep.subr.bf16.mxu0 %v680_v2  ;;  %s453_s28 = sshll.u32 %s177_s27, 4 }
  0x39   : > { %s184_s26 = scalar_lea.vmem %s859_s0, %s455_s20  ;;  %s179_s4 = scalar_lea.vmem [#allocation5], %s453_s28 }
  0x3a   : > { %v188_v3 = vld [vmem:[%s184_s26] sm:$0xff]  ;;  %v189_v4 = vld [vmem:[%s184_s26 + $0x8] sm:$0xff]  ;;  %s373_s5 = sshll.u32 %s179_s4, 4  ;;  %s472_s6 = sshll.u32 %s729_s16, 8  ;;  %s811_s5 = int_to_ptr.vmem [resolvable:$true] %s373_s5 }
  0x3b   : > { %217 = vperm.xlu1 %564, %v188_v3   ;;  %209 = vperm.xlu0 %563, %v188_v3   ;;  %s816_s9 = scalar_lea.hbm %s862_s3, %s472_s6  ;;  %s818_s10 = scalar_lea.sflag [#allocation4], %s177_s27 }
  0x3c   : > { %485 = vmatpush3.bf16.msra.mxu0 %v572_v6  ;;  %s607_s16 = scalar_lea.vmem %s811_s5, 256  ;;  %p873_p9 = scmp.ne.s32.totalorder %s866_s22, 0 }
  0x3d   : > { %486 = vmatprep.subr.bf16.mxu0 %v680_v2  ;;  %p608_p6 = scmp.ne.s32.totalorder %s811_s5, %s607_s16  ;;  %s685_s11 = smov [#allocation5]  }
  0x3e   : > { %s611_s17 = sshll.u32 %s685_s11, 4  ;;  %s612_s17 = int_to_ptr.vmem [resolvable:$false] %s611_s17 }
  0x3f   : > { %220 = vperm.xlu1 %564, %v189_v4   ;;  %212 = vperm.xlu0 %563, %v189_v4   ;;  %p609_p10 = pnand %p608_p6, %p873_p9  ;;  %s613_s19 = scalar_lea.vmem %s612_s17, 512 }
  0x40   : > { %487 = vmatpush3.bf16.msra.mxu0 %v573_v7  ;;  %p614_p2 = scmp.lt.s32.totalorder %s811_s5, %s612_s17  ;;  %p615_p3 = scmp.lt.s32.totalorder %s613_s19, %s607_s16 }
  0x41   : > { %488 = vmatprep.subr.bf16.mxu0 %v680_v2  ;;  %p610_p12 = pneg %p609_p10 }
  0x42   : > { %p616_p4 = por %p615_p3, %p614_p2 }
  0x43   : > { %566 = vset.pattern.permute.xlu1 %v681_v8  ;;  %565 = vset.pattern.permute.xlu0 %v681_v8 }
  0x44   : > { %230 = vperm.xlu1 %566, %v189_v4   ;;  %227 = vperm.xlu0 %565, %v188_v3   ;;  %p617_p7 = pnand %p616_p4, %p610_p12 }
  0x45   : > { %489 = vmatpush3.bf16.msra.mxu0 %v574_v9 }
  0x46   : > { %490 = vmatprep.subr.bf16.mxu0 %v680_v2 }
  0x48   : > { %567 = vset.pattern.permute.xlu1 %v682_v10  ;;  %568 = vset.pattern.permute.xlu0 %v682_v10 }
  0x49   : > { %237 = vperm.xlu1 %567, %v188_v3   ;;  %240 = vperm.xlu0 %568, %v189_v4  }
  0x4a   : > { %491 = vmatpush3.bf16.msra.mxu0 %v575_v11 }
  0x4b   : > { %492 = vmatprep.subr.bf16.mxu0 %v680_v2 }
  0x4d   : > { %569 = vset.pattern.permute.xlu1 %v683_v12  ;;  %570 = vset.pattern.permute.xlu0 %v683_v12 }
  0x4e   : > { %247 = vperm.xlu1 %569, %v188_v3   ;;  %493 = vmatpush3.bf16.msra.mxu0 %v576_v13 }
  0x4f   : > { %494 = vmatprep.subr.bf16.mxu0 %v680_v2 }
  0x52   : > { %250 = vperm.xlu1 %569, %v189_v4   ;;  %495 = vmatpush3.bf16.msra.mxu0 %v577_v14 }
  0x53   : > { %496 = vmatprep.subr.bf16.mxu0 %v680_v2 }
  0x56   : > { %497 = vmatpush3.bf16.msra.mxu0 %v578_v15 }
  0xba   : > { %v218_v16 = vpop.permute.xlu1 %217  ;;  %v210_v17 = vpop.permute.xlu0 %209 }
  0xbb   : > { %vm222_vm1 = vcmp.eq.s32.totalorder %v207_v22, %v218_v16  ;;  %vm214_vm2 = vcmp.eq.s32.totalorder %v207_v22, %v210_v17 }
  0xbc   : > { %vm224_vm6 = vmor %vm214_vm2, %vm222_vm1 }
  0xbe   : > { %v221_v18 = vpop.permute.xlu1 %220  ;;  %v213_v19 = vpop.permute.xlu0 %212 }
  0xbf   : > { %vm223_vm3 = vcmp.eq.s32.totalorder %v207_v22, %v221_v18  ;;  %vm215_vm4 = vcmp.eq.s32.totalorder %v207_v22, %v213_v19 }
  0xc0   : > { %vm225_vm8 = vmor %vm215_vm4, %vm223_vm3 }
  0xc3   : > { %v231_v21 = vpop.permute.xlu1 %230  ;;  %v228_v23 = vpop.permute.xlu0 %227 }
  0xc4   : > { %vm233_vm5 = vcmp.eq.s32.totalorder %v207_v22, %v231_v21  ;;  %vm232_vm7 = vcmp.eq.s32.totalorder %v207_v22, %v228_v23 }
  0xc5   : > { %vm235_vm10 = vmor %vm225_vm8, %vm233_vm5 }
  0xc6   : > { %vm234_vm12 = vmor %vm224_vm6, %vm232_vm7 }
  0xc8   : > { %v238_v24 = vpop.permute.xlu1 %237  ;;  %v241_v25 = vpop.permute.xlu0 %240 }
  0xc9   : > { %vm242_vm9 = vcmp.eq.s32.totalorder %v207_v22, %v238_v24  ;;  %vm243_vm13 = vcmp.eq.s32.totalorder %v207_v22, %v241_v25 }
  0xca   : > { %vm244_vm14 = vmor %vm234_vm12, %vm242_vm9 }
  0xcb   : > { %vm245_vm0 = vmor %vm235_vm10, %vm243_vm13 }
  0xcd   : > { %v248_v26 = vpop.permute.xlu1 %247 }
  0xce   : > { %vm252_vm11 = vcmp.eq.s32.totalorder %v207_v22, %v248_v26 }
  0xcf   : > { %vm254_vm15 = vmor %vm244_vm14, %vm252_vm11 }
  0xd0   : > { %v456_v28 = vsel %vm254_vm15, 1.0, %v680_v2 }
  0xd1   : > { %v251_v27 = vpop.permute.xlu1 %250 }
  0xd2   : > { %vm253_vm1 = vcmp.eq.s32.totalorder %v207_v22, %v251_v27 }
  0xd3   : > { %vm255_vm2 = vmor %vm245_vm0, %vm253_vm1 }
  0xd4   : > { %v457_v29 = vsel %vm255_vm2, 1.0, %v680_v2 }
  0xd5   : > { %v260_v30 = vpack.c.bf16 %v457_v29, %v456_v28 }
  0xd7   : > { %499 = vmatmul.mubr.bf16.vlgmr.msra.gmra.mrb[0].mxu0 %v260_v30 }
 0x1aa   : > { %v350_v32 = vpop.f32.mrb[0].mxu0 }
 0x1ab   : > { %v351_v33 = vadd.f32 %v458_v31, %v350_v32  ;;  %v500_v34 = vpop.f32.mrb[1].mxu0 }
 0x1ac   : > { %v353_v35 = vpop.f32.mrb[2].mxu0 }
 0x1ad   : > { %357 = vst [vmem:[%s179_s4] sm:$0xff] %v351_v33  ;;  %v354_v36 = vadd.f32 %v458_v31, %v353_v35  ;;  %v501_v37 = vpop.f32.mrb[3].mxu0 }
 0x1af   : > { %358 = vst [vmem:[%s179_s4 + $0x8] sm:$0xff] %v354_v36 }
 0x1b0   : > { %620 = shalt.err (!%p617_p7)
}
 0x1b1   : > { %s621_s20 = scalar_lea.hbm %s816_s9, 256  ;;  %s625_s26 = scalar_lea.hbm %s862_s3, 512 }
 0x1b2   : > { %p622_p8 = scmp.ne.s32.totalorder %s816_s9, %s621_s20  ;;  %p626_p1 = scmp.lt.u32.totalorder %s816_s9, %s862_s3 }
 0x1b3   : > { %p627_p0 = scmp.lt.u32.totalorder %s625_s26, %s621_s20  ;;  %p629_p6 = scmp.lt.u32.totalorder %s621_s20, %s816_s9 }
 0x1b4   : > { %p623_p11 = pnand %p622_p8, %p873_p9 }
 0x1b5   : > { %p628_p5 = por %p627_p0, %p626_p1 }
 0x1b6   : > { %p624_p13 = pneg %p623_p11 }
 0x1b7   : > { %p630_p10 = por %p629_p6, %p628_p5 }
 0x1b9   : > { %p631_p12 = pnand %p630_p10, %p624_p13 }
 0x1bb   : > { %634 = shalt.err (!%p631_p12)
}
 0x1bc   : > { %s686_s29 = smov 128   ;;  %s687_s30 = smov 8  }
 0x1bd   : > { %506 = dma.vmem_to_hbm [thread:$0]  (%p873_p9), %s811_s5, 256, %s816_s9, %s818_s10, %s686_s29, %s686_s29, %s687_s30  }
 0x1be PF: > { %p518_p2 = scmp.ge.s32.totalorder %s673_s15, 2  ;;  %s388_s4 = sand.u32 1, %s661_s12  }
 0x1bf   : > { %p874_p3 = scmp.ne.s32.totalorder %s867_s23, 0  ;;  %s389_s6 = scalar_lea.sflag [#allocation4], %s388_s4 }
 0x1c1   : > { %p513_p4 = pnand %p518_p2, %p874_p3 }
 0x1c3   : > { %656 = dma.done.wait (!%p513_p4), %s389_s6, 256  }
 0x1c4   : > { %658 = vsyncadd (!%p513_p4), %s389_s6, 4294967040  ;;  %p14_p7 = scmp.ge.s32.totalorder %s733_s18, 4   ;;  %s875_s12 = smov %s665_s13 }
 0x1c5   : > { %s876_s13 = smov %s669_s14  ;;  %s877_s14 = smov %s744_s21 }
 0x1c6   : > { %s878_s15 = smov %s733_s18  ;;  %16 = sbr.rel (!%p14_p7) target bundleno = 4 (0x4), region = 72 }
 0x1cd   :  { %394 = vsyncpa [#allocation3], 1 }
 0x1ce   :  { %396 = vsyncpa [#allocation3 + $0x1], 1 }
 0x1cf   :  { %397 = vsyncpa [#allocation4], 1 }
 0x1d0   :  { %399 = vsyncpa [#allocation4 + $0x1], 1 }

// kernel: tpu_custom_call.1
= control target key start
LH: loop header
LB: loop body
LE: loop exit
PB: predicated region body
PF: predicated region fallthrough
CT: control target
= control target key end

     0   :  { %8 = vsyncpa [#allocation3], 0  ;;  %s859_s0 = inlined_call_operand.vmem [shape: s32[32,5], index: 0, kind: input, shape index: {}]   ;;  %s860_s1 = inlined_call_operand.hbm [shape: bf16[128,128], index: 1, kind: input, shape index: {}]   ;;  %s861_s2 = inlined_call_operand.vmem [shape: f32[1,128], index: 2, kind: input, shape index: {}]   ;;  %s862_s3 = inlined_call_operand.hbm [shape: f32[32,128], index: 3, kind: output, shape index: {}]  }
   0x1   :  { %9 = vsyncpa [#allocation4], 0 }
   0x2   :  { %11 = vsyncpa [#allocation4 + $0x1], 0  ;;  %s708_s12 = smov 0   ;;  %s710_s13 = smov 0  }
   0x3   :  { %s712_s14 = smov 0   ;;  %s714_s15 = smov 0  }
   0x4 LB: > { %s729_s16 = sadd.s32 4294967295, %s673_s15   ;;  %s447_s17 = sadd.s32 4294967294, %s673_s15   ;;  %s673_s15 = sphi %s714_s15, %s878_s15   ;;  %s669_s14 = sphi %s712_s14, %s877_s14   ;;  %s665_s13 = sphi %s710_s13, %s876_s13   ;;  %s661_s12 = sphi %s708_s12, %s875_s12  }
   0x5   : > { %s733_s18 = sadd.s32 1, %s673_s15   ;;  %s92_s19 = sadd.s32 1, %s669_s14 }
   0x6   : > { %s89_s20 = ssub.s32 %s673_s15, %s733_s18  ;;  %p102_p0 = scmp.ne.s32.totalorder %s669_s14, %s665_s13 }
   0x7   : > { %p90_p1 = scmp.eq.s32.totalorder %s89_s20, 0  ;;  %p103_p2 = scmp.eq.s32.totalorder %s729_s16, 1 }
   0x8   : > { %p108_p3 = scmp.ne.s32.totalorder %s665_s13, %s661_s12  ;;  %p109_p4 = scmp.eq.s32.totalorder %s447_s17, 1 }
   0x9   : > { %s744_s21 = scalar_select %p90_p1, %s669_s14, %s92_s19  }
   0xa   : > { %p746_p5 = por %p103_p2, %p102_p0  ;;  %p750_p6 = por %p109_p4, %p108_p3 }
   0xb   : > { %p448_p7 = scmp.ge.s32.totalorder %s673_s15, 1  ;;  %p116_p8 = scmp.lt.s32.totalorder %s673_s15, 3 }
   0xc   : > { %s866_s22 = scalar_select %p746_p5, 1, 0 }
   0xd   : > { %s867_s23 = scalar_select %p750_p6, 1, 0 }
   0xe   : > { %p863_p9 = scmp.eq.s32.totalorder %s729_s16, 0  ;;  %p757_p10 = pnand %p448_p7, %p116_p8 }
   0xf   : > { %s675_s25 = smov [#allocation2]   ;;  %s579_s30 = scalar_lea.hbm %s860_s1, 1024 }
  0x10   : > { %s868_s24 = scalar_select %p757_p10, 1, 0 }
  0x11   : > { %s128_s26 = sshll.u32 %s675_s25, 4  ;;  %p508_p11 = pneg %p757_p10  ;;  %s129_s26 = int_to_ptr.vmem [resolvable:$true] %s128_s26 }
  0x12   : > { %p580_p13 = scmp.ne.s32.totalorder %s860_s1, %s579_s30  ;;  %p586_p3 = scmp.lt.u32.totalorder %s579_s30, %s860_s1 }
  0x13   : > { %p765_p12 = pnand %p863_p9, %p508_p11 }
  0x15   : > { %p581_p0 = pneg %p765_p12 }
  0x17   : > { %p582_p1 = pnand %p581_p0, %p580_p13 }
  0x19   : > { %p583_p2 = pneg %p582_p1 }
  0x1b   : > { %p588_p4 = pnand %p586_p3, %p583_p2 }
  0x1d   : > { %591 = shalt.err (!%p588_p4)
}
  0x1e   : > { %s592_s8 = scalar_lea.vmem %s129_s26, 1024  ;;  %p600_p9 = scmp.lt.s32.totalorder %s129_s26, %s129_s26 }
  0x1f   : > { %p593_p7 = scmp.ne.s32.totalorder %s129_s26, %s592_s8  ;;  %p601_p6 = scmp.lt.s32.totalorder %s592_s8, %s592_s8 }
  0x21   : > { %p595_p8 = pnand %p593_p7, %p581_p0  ;;  %p602_p5 = por %p601_p6, %p600_p9 }
  0x23   : > { %p596_p11 = pneg %p595_p8 }
  0x25   : > { %p603_p10 = pnand %p602_p5, %p596_p11 }
  0x27   : > { %606 = shalt.err (!%p603_p10)
}
  0x28   : > { %s676_s9 = smov 64   ;;  %s677_s10 = smov 4  }
  0x29   : > { %511 = dma.hbm_to_vmem [thread:$0]  (!%p765_p12), %s860_s1, 1024, %s129_s26, [#allocation3], %s676_s9, %s676_s9, %s677_s10  }
  0x2a   : > { %p870_p13 = scmp.ne.s32.totalorder %s868_s24, 0 }
  0x2b   : > { %p871_p1 = scmp.eq.s32.totalorder (!%p870_p13), %s729_s16, 0 }
  0x2c   : > { %156 = sbr.rel (%p870_p13) target bundleno = 446 (0x1be), region = 32 }
  0x33   : > { %652 = dma.done.wait (%p871_p1), [#allocation3], 1024   ;;  %p872_p0 = pmov %p871_p1 }
  0x34   : > { %s454_s19 = sshll.u32 %s729_s16, 1  ;;  %v678_v0 = vmov 1   ;;  %v679_v1 = vmov 0   ;;  %v680_v2 = vmov 0.0   ;;  %v571_v5 = vld [vmem:[#allocation2] sm:$0xff]   ;;  %v572_v6 = vld [vmem:[#allocation2 + $0x8] sm:$0xff]   ;;  %v206_v20 = vlaneseq }
  0x35   : > { %654 = vsyncadd (%p872_p0), [#allocation3], 4294966272  ;;  %564 = vset.pattern.permute.xlu1 %v678_v0  ;;  %563 = vset.pattern.permute.xlu0 %v679_v1  ;;  %p181_p5 = scmp.lt.s32.totalorder %s454_s19, 3  ;;  %v573_v7 = vld [vmem:[#allocation2 + $0x10] sm:$0xff]   ;;  %v681_v8 = vmov 2   ;;  %v574_v9 = vld [vmem:[#allocation2 + $0x18] sm:$0xff]  }
  0x36   : > { %482 = vmatprep.subr.bf16.mxu0 %v680_v2  ;;  %v682_v10 = vmov 3   ;;  %v575_v11 = vld [vmem:[#allocation2 + $0x20] sm:$0xff]   ;;  %v683_v12 = vmov 4   ;;  %v576_v13 = vld [vmem:[#allocation2 + $0x28] sm:$0xff]   ;;  %v577_v14 = vld [vmem:[#allocation2 + $0x30] sm:$0xff]   ;;  %vm684_vm0 = vmmov 0  }
  0x37   : > { %s880_s19 = smov (!%p181_p5, %s454_s19), 3  ;;  %483 = vmatpush3.bf16.msra.mxu0 %v571_v5  ;;  %v578_v15 = vld [vmem:[#allocation2 + $0x38] sm:$0xff]   ;;  %498 = vmatprep.mubr.msk.bf16.mxu0 %vm684_vm0, %v680_v2  ;;  %v207_v22 = vand.u32 127, %v206_v20  ;;  %s177_s27 = sand.u32 1, %s665_s13   ;;  %v458_v31 = vld [vmem:[%s861_s2] ss:$0 sm:$0xff] }
  0x38   : > { %s455_s20 = sshll.u32 %s880_s19, 3  ;;  %484 = vmatprep.subr.bf16.mxu0 %v680_v2  ;;  %s453_s28 = sshll.u32 %s177_s27, 4 }
  0x39   : > { %s184_s26 = scalar_lea.vmem %s859_s0, %s455_s20  ;;  %s179_s4 = scalar_lea.vmem [#allocation5], %s453_s28 }
  0x3a   : > { %v188_v3 = vld [vmem:[%s184_s26] sm:$0xff]  ;;  %v189_v4 = vld [vmem:[%s184_s26 + $0x8] sm:$0xff]  ;;  %s373_s5 = sshll.u32 %s179_s4, 4  ;;  %s472_s6 = sshll.u32 %s729_s16, 8  ;;  %s811_s5 = int_to_ptr.vmem [resolvable:$true] %s373_s5 }
  0x3b   : > { %217 = vperm.xlu1 %564, %v188_v3   ;;  %209 = vperm.xlu0 %563, %v188_v3   ;;  %s816_s9 = scalar_lea.hbm %s862_s3, %s472_s6  ;;  %s818_s10 = scalar_lea.sflag [#allocation4], %s177_s27 }
  0x3c   : > { %485 = vmatpush3.bf16.msra.mxu0 %v572_v6  ;;  %s607_s16 = scalar_lea.vmem %s811_s5, 256  ;;  %p873_p9 = scmp.ne.s32.totalorder %s866_s22, 0 }
  0x3d   : > { %486 = vmatprep.subr.bf16.mxu0 %v680_v2  ;;  %p608_p6 = scmp.ne.s32.totalorder %s811_s5, %s607_s16  ;;  %s685_s11 = smov [#allocation5]  }
  0x3e   : > { %s611_s17 = sshll.u32 %s685_s11, 4  ;;  %s612_s17 = int_to_ptr.vmem [resolvable:$false] %s611_s17 }
  0x3f   : > { %220 = vperm.xlu1 %564, %v189_v4   ;;  %212 = vperm.xlu0 %563, %v189_v4   ;;  %p609_p10 = pnand %p608_p6, %p873_p9  ;;  %s613_s19 = scalar_lea.vmem %s612_s17, 512 }
  0x40   : > { %487 = vmatpush3.bf16.msra.mxu0 %v573_v7  ;;  %p614_p2 = scmp.lt.s32.totalorder %s811_s5, %s612_s17  ;;  %p615_p3 = scmp.lt.s32.totalorder %s613_s19, %s607_s16 }
  0x41   : > { %488 = vmatprep.subr.bf16.mxu0 %v680_v2  ;;  %p610_p12 = pneg %p609_p10 }
  0x42   : > { %p616_p4 = por %p615_p3, %p614_p2 }
  0x43   : > { %566 = vset.pattern.permute.xlu1 %v681_v8  ;;  %565 = vset.pattern.permute.xlu0 %v681_v8 }
  0x44   : > { %230 = vperm.xlu1 %566, %v189_v4   ;;  %227 = vperm.xlu0 %565, %v188_v3   ;;  %p617_p7 = pnand %p616_p4, %p610_p12 }
  0x45   : > { %489 = vmatpush3.bf16.msra.mxu0 %v574_v9 }
  0x46   : > { %490 = vmatprep.subr.bf16.mxu0 %v680_v2 }
  0x48   : > { %567 = vset.pattern.permute.xlu1 %v682_v10  ;;  %568 = vset.pattern.permute.xlu0 %v682_v10 }
  0x49   : > { %237 = vperm.xlu1 %567, %v188_v3   ;;  %240 = vperm.xlu0 %568, %v189_v4  }
  0x4a   : > { %491 = vmatpush3.bf16.msra.mxu0 %v575_v11 }
  0x4b   : > { %492 = vmatprep.subr.bf16.mxu0 %v680_v2 }
  0x4d   : > { %569 = vset.pattern.permute.xlu1 %v683_v12  ;;  %570 = vset.pattern.permute.xlu0 %v683_v12 }
  0x4e   : > { %247 = vperm.xlu1 %569, %v188_v3   ;;  %493 = vmatpush3.bf16.msra.mxu0 %v576_v13 }
  0x4f   : > { %494 = vmatprep.subr.bf16.mxu0 %v680_v2 }
  0x52   : > { %250 = vperm.xlu1 %569, %v189_v4   ;;  %495 = vmatpush3.bf16.msra.mxu0 %v577_v14 }
  0x53   : > { %496 = vmatprep.subr.bf16.mxu0 %v680_v2 }
  0x56   : > { %497 = vmatpush3.bf16.msra.mxu0 %v578_v15 }
  0xba   : > { %v218_v16 = vpop.permute.xlu1 %217  ;;  %v210_v17 = vpop.permute.xlu0 %209 }
  0xbb   : > { %vm222_vm1 = vcmp.eq.s32.totalorder %v207_v22, %v218_v16  ;;  %vm214_vm2 = vcmp.eq.s32.totalorder %v207_v22, %v210_v17 }
  0xbc   : > { %vm224_vm6 = vmor %vm214_vm2, %vm222_vm1 }
  0xbe   : > { %v221_v18 = vpop.permute.xlu1 %220  ;;  %v213_v19 = vpop.permute.xlu0 %212 }
  0xbf   : > { %vm223_vm3 = vcmp.eq.s32.totalorder %v207_v22, %v221_v18  ;;  %vm215_vm4 = vcmp.eq.s32.totalorder %v207_v22, %v213_v19 }
  0xc0   : > { %vm225_vm8 = vmor %vm215_vm4, %vm223_vm3 }
  0xc3   : > { %v231_v21 = vpop.permute.xlu1 %230  ;;  %v228_v23 = vpop.permute.xlu0 %227 }
  0xc4   : > { %vm233_vm5 = vcmp.eq.s32.totalorder %v207_v22, %v231_v21  ;;  %vm232_vm7 = vcmp.eq.s32.totalorder %v207_v22, %v228_v23 }
  0xc5   : > { %vm235_vm10 = vmor %vm225_vm8, %vm233_vm5 }
  0xc6   : > { %vm234_vm12 = vmor %vm224_vm6, %vm232_vm7 }
  0xc8   : > { %v238_v24 = vpop.permute.xlu1 %237  ;;  %v241_v25 = vpop.permute.xlu0 %240 }
  0xc9   : > { %vm242_vm9 = vcmp.eq.s32.totalorder %v207_v22, %v238_v24  ;;  %vm243_vm13 = vcmp.eq.s32.totalorder %v207_v22, %v241_v25 }
  0xca   : > { %vm244_vm14 = vmor %vm234_vm12, %vm242_vm9 }
  0xcb   : > { %vm245_vm0 = vmor %vm235_vm10, %vm243_vm13 }
  0xcd   : > { %v248_v26 = vpop.permute.xlu1 %247 }
  0xce   : > { %vm252_vm11 = vcmp.eq.s32.totalorder %v207_v22, %v248_v26 }
  0xcf   : > { %vm254_vm15 = vmor %vm244_vm14, %vm252_vm11 }
  0xd0   : > { %v456_v28 = vsel %vm254_vm15, 1.0, %v680_v2 }
  0xd1   : > { %v251_v27 = vpop.permute.xlu1 %250 }
  0xd2   : > { %vm253_vm1 = vcmp.eq.s32.totalorder %v207_v22, %v251_v27 }
  0xd3   : > { %vm255_vm2 = vmor %vm245_vm0, %vm253_vm1 }
  0xd4   : > { %v457_v29 = vsel %vm255_vm2, 1.0, %v680_v2 }
  0xd5   : > { %v260_v30 = vpack.c.bf16 %v457_v29, %v456_v28 }
  0xd7   : > { %499 = vmatmul.mubr.bf16.vlgmr.msra.gmra.mrb[0].mxu0 %v260_v30 }
 0x1aa   : > { %v350_v32 = vpop.f32.mrb[0].mxu0 }
 0x1ab   : > { %v351_v33 = vadd.f32 %v458_v31, %v350_v32  ;;  %v500_v34 = vpop.f32.mrb[1].mxu0 }
 0x1ac   : > { %v353_v35 = vpop.f32.mrb[2].mxu0 }
 0x1ad   : > { %357 = vst [vmem:[%s179_s4] sm:$0xff] %v351_v33  ;;  %v354_v36 = vadd.f32 %v458_v31, %v353_v35  ;;  %v501_v37 = vpop.f32.mrb[3].mxu0 }
 0x1af   : > { %358 = vst [vmem:[%s179_s4 + $0x8] sm:$0xff] %v354_v36 }
 0x1b0   : > { %620 = shalt.err (!%p617_p7)
}
 0x1b1   : > { %s621_s20 = scalar_lea.hbm %s816_s9, 256  ;;  %s625_s26 = scalar_lea.hbm %s862_s3, 512 }
 0x1b2   : > { %p622_p8 = scmp.ne.s32.totalorder %s816_s9, %s621_s20  ;;  %p626_p1 = scmp.lt.u32.totalorder %s816_s9, %s862_s3 }
 0x1b3   : > { %p627_p0 = scmp.lt.u32.totalorder %s625_s26, %s621_s20  ;;  %p629_p6 = scmp.lt.u32.totalorder %s621_s20, %s816_s9 }
 0x1b4   : > { %p623_p11 = pnand %p622_p8, %p873_p9 }
 0x1b5   : > { %p628_p5 = por %p627_p0, %p626_p1 }
 0x1b6   : > { %p624_p13 = pneg %p623_p11 }
 0x1b7   : > { %p630_p10 = por %p629_p6, %p628_p5 }
 0x1b9   : > { %p631_p12 = pnand %p630_p10, %p624_p13 }
 0x1bb   : > { %634 = shalt.err (!%p631_p12)
}
 0x1bc   : > { %s686_s29 = smov 128   ;;  %s687_s30 = smov 8  }
 0x1bd   : > { %506 = dma.vmem_to_hbm [thread:$0]  (%p873_p9), %s811_s5, 256, %s816_s9, %s818_s10, %s686_s29, %s686_s29, %s687_s30  }
 0x1be PF: > { %p518_p2 = scmp.ge.s32.totalorder %s673_s15, 2  ;;  %s388_s4 = sand.u32 1, %s661_s12  }
 0x1bf   : > { %p874_p3 = scmp.ne.s32.totalorder %s867_s23, 0  ;;  %s389_s6 = scalar_lea.sflag [#allocation4], %s388_s4 }
 0x1c1   : > { %p513_p4 = pnand %p518_p2, %p874_p3 }
 0x1c3   : > { %656 = dma.done.wait (!%p513_p4), %s389_s6, 256  }
 0x1c4   : > { %658 = vsyncadd (!%p513_p4), %s389_s6, 4294967040  ;;  %p14_p7 = scmp.ge.s32.totalorder %s733_s18, 4   ;;  %s875_s12 = smov %s665_s13 }
 0x1c5   : > { %s876_s13 = smov %s669_s14  ;;  %s877_s14 = smov %s744_s21 }
 0x1c6   : > { %s878_s15 = smov %s733_s18  ;;  %16 = sbr.rel (!%p14_p7) target bundleno = 4 (0x4), region = 72 }
 0x1cd   :  { %394 = vsyncpa [#allocation3], 1 }
 0x1ce   :  { %396 = vsyncpa [#allocation3 + $0x1], 1 }
 0x1cf   :  { %397 = vsyncpa [#allocation4], 1 }
 0x1d0   :  { %399 = vsyncpa [#allocation4 + $0x1], 1 }

</bundles_post_ra>
